<compile_context>
chip_gen: v5e
topology: v5e:2x2
jax: 0.10.0
libtpu: 0.0.40
codegen_flags: <defaults>
</compile_context>

<pallas_src>
import jax
import jax.numpy as jnp
from jax.experimental import pallas as pl
from jax.experimental.pallas import tpu as pltpu

_LANE = 512  # lane-dense last dim (multiple of 128)


def _blend_kernel(alpha_ref, x_ref, b_ref, o_ref):
    # alpha lives in SMEM (scalar prefetch); compute in f32, cast at the store.
    a = alpha_ref[0]
    xf = x_ref[...].astype(jnp.float32)
    bf = b_ref[...].astype(jnp.float32)
    res = xf + a * (bf - xf)  # == (1 - alpha) * x + alpha * b
    if jnp.issubdtype(o_ref.dtype, jnp.integer):
        res = jnp.round(res)
    o_ref[...] = res.astype(o_ref.dtype)


def _pick_tile_rows(rows: int, itemsize: int) -> int:
    """Rows per tile: large enough to amortize the ~0.35us per-grid-step
    overhead, small enough that 3 arrays x 2 pipeline buffers fit the scoped
    VMEM default, with >= 4 grid steps so v7x's two TensorCores both get work."""
    if rows <= 1024:
        # Small input: one full-array block (exempt from the (8,128) rule).
        return rows
    try:
        kind = jax.devices()[0].device_kind.lower()
    except Exception:
        kind = ""
    big_vmem = ("v6" in kind) or ("v7" in kind)  # 32 MiB scoped-VMEM default
    target_bytes = (4 << 20) if big_vmem else (2 << 20)  # per array per tile
    tile = max(32, (target_bytes // (_LANE * itemsize)) // 32 * 32)
    # Keep the grid >= 4 steps so the "parallel" axis shards across both
    # TensorCores on v7x and stays well pipelined elsewhere.
    while tile > 256 and pl.cdiv(rows, tile) < 4:
        tile //= 2
    return tile


def _blend_small(x, b, alpha, dtype):
    """Plain-jnp blend for the ragged tail / tiny inputs (< one lane row)."""
    xf = x.astype(jnp.float32)
    bf = b.astype(jnp.float32)
    a = jnp.asarray(alpha, jnp.float32)
    res = xf + a * (bf - xf)
    if jnp.issubdtype(dtype, jnp.integer):
        res = jnp.round(res)
    return res.astype(dtype)


def blend_image(x: jax.Array, blend: jax.Array, alpha=0.1) -> jax.Array:
    assert x.shape == blend.shape, "x and blend_image must have the same shape"
    orig_shape = x.shape
    dtype = x.dtype
    size = int(x.size)
    itemsize = jnp.dtype(dtype).itemsize

    xf = x.reshape(-1)       # contiguous reshape: no HBM copy
    bf = blend.reshape(-1)

    rows = size // _LANE
    main = rows * _LANE
    tail = size - main

    if rows == 0:
        # Tiny input (< one lane row): not worth a kernel launch.
        return _blend_small(xf, bf, alpha, dtype).reshape(orig_shape)

    x2 = xf[:main].reshape(rows, _LANE)
    b2 = bf[:main].reshape(rows, _LANE)

    alpha_arr = jnp.asarray(alpha, jnp.float32).reshape((1,))

    tile_r = _pick_tile_rows(rows, itemsize)
    grid = (pl.cdiv(rows, tile_r),)
    # index_map receives the scalar-prefetch ref as a trailing positional arg.
    spec = pl.BlockSpec((tile_r, _LANE), lambda i, alpha_ref: (i, 0))

    out2 = pl.pallas_call(
        _blend_kernel,
        out_shape=jax.ShapeDtypeStruct((rows, _LANE), dtype),
        grid_spec=pltpu.PrefetchScalarGridSpec(
            num_scalar_prefetch=1,
            grid=grid,
            in_specs=[spec, spec],
            out_specs=spec,
        ),
        compiler_params=pltpu.CompilerParams(
            dimension_semantics=("parallel",),
        ),
        cost_estimate=pl.CostEstimate(
            flops=3 * main,
            transcendentals=0,
            bytes_accessed=3 * main * itemsize,
        ),
    )(alpha_arr, x2, b2)

    out = out2.reshape(-1)
    if tail:
        # Ragged < _LANE tail: blend outside the kernel instead of padding the
        # whole array (padding would double HBM traffic on this BW-bound op).
        out = jnp.concatenate(
            [out, _blend_small(xf[main:], bf[main:], alpha, dtype)]
        )
    return out.reshape(orig_shape)


if __name__ == "__main__":
    key = jax.random.PRNGKey(0)
    kx, kb = jax.random.split(key)
    alpha = 0.1

    # Primary check: NCHW image matching the module (batch=2, channels=4, 16x16).
    x = jax.random.normal(kx, (2, 4, 16, 16), dtype=jnp.float32)
    blend = jax.random.normal(kb, (2, 4, 16, 16), dtype=jnp.float32)
    out = blend_image(x, blend, alpha)
    jax.block_until_ready(out)
    ref = (1.0 - alpha) * x + alpha * blend
    assert out.shape == x.shape and out.dtype == x.dtype
    assert jnp.allclose(out, ref, atol=1e-5, rtol=1e-5)

    # Secondary check: a shape that exercises the ragged-tail + multi-tile
    # (non-dividing last block) paths.
    kx2, kb2 = jax.random.split(kb)
    x2 = jax.random.normal(kx2, (2, 3, 300, 301), dtype=jnp.float32)
    b2 = jax.random.normal(kb2, (2, 3, 300, 301), dtype=jnp.float32)
    out2 = blend_image(x2, b2, alpha)
    jax.block_until_ready(out2)
    ref2 = (1.0 - alpha) * x2 + alpha * b2
    assert out2.shape == x2.shape and out2.dtype == x2.dtype
    assert jnp.allclose(out2, ref2, atol=1e-5, rtol=1e-5)

    print("KERNEL_OK")
</pallas_src>

<mosaic_0001>
module attributes {stable_mosaic.version = 11 : i64} {
  func.func @_blend_kernel(%arg0: i32, %arg1: memref<1xf32, #tpu.memory_space<smem>>, %arg2: memref<4x512xf32, #tpu.memory_space<vmem>>, %arg3: memref<4x512xf32, #tpu.memory_space<vmem>>, %arg4: memref<4x512xf32, #tpu.memory_space<vmem>>) attributes {dimension_semantics = [#tpu.dimension_semantics<parallel>], iteration_bounds = array<i64: 1>, scalar_prefetch = 1 : i64, scratch_operands = 0 : i64, tpu.core_type = #tpu.core_type<tc>, window_params = [{transform_indices = @transform_0, window_bounds = array<i64: 4, 512>}, {transform_indices = @transform_1, window_bounds = array<i64: 4, 512>}, {transform_indices = @transform_2, window_bounds = array<i64: 4, 512>}]} {
    %c0 = arith.constant 0 : index
    %0 = memref.load %arg1[%c0] : memref<1xf32, #tpu.memory_space<smem>>
    %c0_0 = arith.constant 0 : index
    %c0_1 = arith.constant 0 : index
    %1 = vector.load %arg2[%c0_0, %c0_1] : memref<4x512xf32, #tpu.memory_space<vmem>>, vector<4x512xf32>
    %c0_2 = arith.constant 0 : index
    %c0_3 = arith.constant 0 : index
    %2 = vector.load %arg3[%c0_2, %c0_3] : memref<4x512xf32, #tpu.memory_space<vmem>>, vector<4x512xf32>
    %3 = arith.subf %2, %1 : vector<4x512xf32>
    %4 = vector.broadcast %0 : f32 to vector<4x512xf32>
    %5 = arith.mulf %4, %3 : vector<4x512xf32>
    %6 = arith.addf %1, %5 : vector<4x512xf32>
    %c0_4 = arith.constant 0 : index
    %c0_5 = arith.constant 0 : index
    %7 = vector.load %arg4[%c0_4, %c0_5] : memref<4x512xf32, #tpu.memory_space<vmem>>, vector<4x512xf32>
    tpu.vector_store %arg4[%c0_4, %c0_5], %6 {strides = array<i32>} : memref<4x512xf32, #tpu.memory_space<vmem>>, vector<4x512xf32>,
    return
  }
  func.func @transform_0(%arg0: i32, %arg1: memref<1xf32, #tpu.memory_space<smem>>) -> (i32, i32) {
    %c0_i32 = arith.constant 0 : i32
    %c0_i32_0 = arith.constant 0 : i32
    return %arg0, %c0_i32 : i32, i32
  }
  func.func @transform_1(%arg0: i32, %arg1: memref<1xf32, #tpu.memory_space<smem>>) -> (i32, i32) {
    %c0_i32 = arith.constant 0 : i32
    %c0_i32_0 = arith.constant 0 : i32
    return %arg0, %c0_i32 : i32, i32
  }
  func.func @transform_2(%arg0: i32, %arg1: memref<1xf32, #tpu.memory_space<smem>>) -> (i32, i32) {
    %c0_i32 = arith.constant 0 : i32
    %c0_i32_0 = arith.constant 0 : i32
    return %arg0, %c0_i32 : i32, i32
  }
}

</mosaic_0001>

<bundles_post_ra>
// kernel: tpu_custom_call.1
= control target key start
LH: loop header
LB: loop body
LE: loop exit
PB: predicated region body
PF: predicated region fallthrough
CT: control target
= control target key end

     0   :  { %9 = vsyncpa [#allocation5], 0  ;;  %s190_s0 = inlined_call_operand.<no memory space> [shape: f32[1], index: 0, kind: input, shape index: {}]   ;;  %s191_s1 = inlined_call_operand.hbm [shape: f32[4,512], index: 1, kind: input, shape index: {}]   ;;  %s192_s2 = inlined_call_operand.hbm [shape: f32[4,512], index: 2, kind: input, shape index: {}]   ;;  %s193_s3 = inlined_call_operand.hbm [shape: f32[4,512], index: 3, kind: output, shape index: {}]  }
   0x1   :  { %10 = vsyncpa [#allocation8], 0 }
   0x2   :  { %11 = vsyncpa [#allocation6], 0  ;;  %s17_s14 = sshll.u32 %s191_s1, 4  ;;  %s155_s15 = smov [#allocation4]   ;;  %s18_s14 = int_to_ptr.hbm [resolvable:$true] %s17_s14 }
   0x3   :  { %s19_s16 = sshll.u32 %s155_s15, 4  ;;  %s28_s19 = sshll.u32 %s192_s2, 4  ;;  %s20_s16 = int_to_ptr.vmem [resolvable:$true] %s19_s16  ;;  %s29_s19 = int_to_ptr.hbm [resolvable:$true] %s28_s19 }
   0x4   :  { %22 = dma.hbm_to_vmem [thread:$0]  %s18_s14, 256, %s20_s16, [#allocation5]  }
   0x5   :  { %s156_s20 = smov [#allocation7]  }
   0x6   :  { %s30_s21 = sshll.u32 %s156_s20, 4  ;;  %s31_s21 = int_to_ptr.vmem [resolvable:$true] %s30_s21 }
   0x7   :  { %33 = dma.hbm_to_vmem [thread:$0]  %s29_s19, 256, %s31_s21, [#allocation8]  }
   0x8   :  { %149 = dma.done.wait [#allocation5], 256  }
   0x9   :  { %150 = vsyncadd [#allocation5], 4294967040 }
   0xa   :  { %151 = dma.done.wait [#allocation8], 256  }
   0xb   :  { %152 = vsyncadd [#allocation8], 4294967040  ;;  %v43_v0 = vld [vmem:[#allocation4] sm:$0xff]  ;;  %v45_v1 = vld [vmem:[#allocation7] sm:$0xff]  ;;  %v49_v2 = vstv %s190_s0  ;;  %s157_s2 = smov [#allocation9]   ;;  %s63_s26 = sshll.u32 %s193_s3, 4  ;;  %s64_s26 = int_to_ptr.hbm [resolvable:$true] %s63_s26 }
   0xc   :  { %v44_v3 = vld [vmem:[#allocation4 + $0x8] sm:$0xff]  ;;  %v47_v4 = vsub.f32 %v45_v1, %v43_v0  ;;  %v46_v5 = vld [vmem:[#allocation7 + $0x8] sm:$0xff]  ;;  %s61_s23 = sshll.u32 %s157_s2, 4  ;;  %s62_s23 = int_to_ptr.vmem [resolvable:$true] %s61_s23 }
   0xd   :  { %v48_v6 = vsub.f32 %v46_v5, %v44_v3 }
   0xe   :  { %v50_v7 = vmul.f32 %v49_v2, %v47_v4 }
   0xf   :  { %v51_v8 = vmul.f32 %v49_v2, %v48_v6 }
  0x10   :  { %v52_v9 = vadd.f32 %v50_v7, %v43_v0 }
  0x11   :  { %v53_v10 = vadd.f32 %v51_v8, %v44_v3 }
  0x12   :  { %54 = vst [vmem:[#allocation9] sm:$0xff] %v52_v9 }
  0x13   :  { %55 = vst [vmem:[#allocation9 + $0x8] sm:$0xff] %v53_v10 }
  0x14   :  { %66 = dma.vmem_to_hbm [thread:$0]  %s62_s23, 256, %s64_s26, [#allocation6]  }
  0x15   :  { %153 = dma.done.wait [#allocation6], 256  }
  0x16   :  { %154 = vsyncadd [#allocation6], 4294967040 }
  0x17   :  { %71 = vsyncpa [#allocation5], 1 }
  0x18   :  { %72 = vsyncpa [#allocation8], 1 }
  0x19   :  { %73 = vsyncpa [#allocation6], 1 }

</bundles_post_ra>
